<compile_context>
chip_gen: v6e
topology: v6e:2x2x1
jax: 0.10.0
libtpu: 0.0.40
codegen_flags: <defaults>
</compile_context>

<pallas_src>
import functools

import jax
import jax.numpy as jnp
from jax.experimental import pallas as pl
from jax.experimental.pallas import tpu as pltpu


def _round_up(x: int, m: int) -> int:
    return ((x + m - 1) // m) * m


def _apply_activation(y, activation: str):
    # y is f32; keep the epilogue math in f32 (works on v5e/v6e/v7x alike).
    if activation == "none":
        return y
    if activation == "relu":
        return jnp.maximum(y, 0.0)
    if activation == "gelu":
        # PyTorch nn.GELU default is the exact (erf) formulation.
        return jax.nn.gelu(y, approximate=False)
    if activation == "sigmoid":
        return jax.nn.sigmoid(y)
    if activation == "tanh":
        return jnp.tanh(y)
    if activation == "softmax":
        # torch.nn.Softmax() on a 2-D input resolves to dim=1 (the last axis).
        # The full (padded) N row lives in this tile (enforced by tile selection).
        y_max = jnp.max(y, axis=-1, keepdims=True)
        e = jnp.exp(y - y_max)
        denom = jnp.sum(e, axis=-1, keepdims=True)
        return e * pl.reciprocal(denom, approx=True)  # EUP slot, ~free in epilogue
    raise ValueError(f"unknown activation: {activation}")


def _dense_kernel_single_k(x_ref, w_ref, b_ref, o_ref, *, activation: str):
    # Whole K in one tile: no accumulator scratch round-trip needed.
    y = jnp.dot(x_ref[...], w_ref[...], preferred_element_type=jnp.float32)
    y = y + b_ref[...]
    y = _apply_activation(y, activation)
    o_ref[...] = y.astype(o_ref.dtype)


def _dense_kernel_multi_k(x_ref, w_ref, b_ref, o_ref, acc_ref, *, activation: str):
    # x: [tm, tk], w: [tk, tn] (K-major, pre-transposed), b: [1, tn] f32.
    k = pl.program_id(2)

    @pl.when(k == 0)
    def _():
        acc_ref[...] = jnp.zeros_like(acc_ref)

    acc_ref[...] += jnp.dot(
        x_ref[...], w_ref[...], preferred_element_type=jnp.float32
    )

    @pl.when(k == pl.num_programs(2) - 1)
    def _():
        y = acc_ref[...] + b_ref[...]          # bias only once, in the finalize branch
        y = _apply_activation(y, activation)
        o_ref[...] = y.astype(o_ref.dtype)


def _pick_tiles(batch: int, prev: int, size: int, activation: str):
    # M tile: sublane-aligned (8 for f32), capped at 256.
    tm = _round_up(batch, 8) if batch < 256 else 256
    # K tile: lane-aligned, capped at 1024 (bigger tiles → fewer grid steps, less
    # per-step overhead; still fits VMEM with double buffering).
    tk = _round_up(prev, 128) if prev < 1024 else 1024
    # N tile: lane-aligned. Row-wise softmax needs the whole row in one tile.
    n_lane = _round_up(size, 128)
    if activation == "softmax":
        # TODO(synk): an extremely wide softmax (N tile exceeding VMEM) would need an
        # online / two-pass formulation; typical layer widths fit comfortably.
        tn = n_lane
    else:
        tn = n_lane if n_lane < 512 else 512
    return tm, tk, tn


def dense_forward(x, weight_t, bias, activation: str = "none",
                  *, tile_m=None, tile_k=None, tile_n=None):
    """activation(x @ weight_t + bias) with weight_t laid out as [prev, size]."""
    batch, prev = x.shape
    prev_w, size = weight_t.shape
    assert prev == prev_w, (prev, prev_w)

    tm, tk, tn = _pick_tiles(batch, prev, size, activation)
    if tile_m is not None:
        tm = tile_m
    if tile_k is not None:
        tk = tile_k
    if tile_n is not None:
        tn = tile_n

    m_pad = _round_up(batch, tm)
    k_pad = _round_up(prev, tk)
    n_pad = _round_up(size, tn)

    # Pad operands to tile-aligned shapes (no-ops when already aligned).
    x_p = x
    if (m_pad, k_pad) != (batch, prev):
        x_p = jnp.pad(x, ((0, m_pad - batch), (0, k_pad - prev)))
    w_p = weight_t
    if (k_pad, n_pad) != (prev, size):
        w_p = jnp.pad(weight_t, ((0, k_pad - prev), (0, n_pad - size)))

    bias2d = bias.reshape(1, size).astype(jnp.float32)
    if n_pad != size:
        # For softmax, padded logit columns must not contribute to the row sum.
        pad_val = -1e30 if activation == "softmax" else 0.0
        bias2d = jnp.pad(bias2d, ((0, 0), (0, n_pad - size)),
                         constant_values=pad_val)

    n_k = k_pad // tk
    common_params = dict(
        out_shape=jax.ShapeDtypeStruct((m_pad, n_pad), x.dtype),
    )

    if n_k == 1:
        # Fast path: the whole reduction fits in one K tile.
        out_p = pl.pallas_call(
            functools.partial(_dense_kernel_single_k, activation=activation),
            grid=(m_pad // tm, n_pad // tn),
            in_specs=[
                pl.BlockSpec((tm, tk), lambda i, j: (i, 0)),   # x tile
                pl.BlockSpec((tk, tn), lambda i, j: (0, j)),   # weight (K-major) tile
                pl.BlockSpec((1, tn), lambda i, j: (0, j)),    # bias tile
            ],
            out_specs=pl.BlockSpec((tm, tn), lambda i, j: (i, j)),
            compiler_params=pltpu.CompilerParams(
                dimension_semantics=("parallel", "parallel"),
                vmem_limit_bytes=48 * 1024 * 1024,
            ),
            **common_params,
        )(x_p, w_p, bias2d)
    else:
        out_p = pl.pallas_call(
            functools.partial(_dense_kernel_multi_k, activation=activation),
            grid=(m_pad // tm, n_pad // tn, n_k),
            in_specs=[
                pl.BlockSpec((tm, tk), lambda i, j, k: (i, k)),   # x tile
                pl.BlockSpec((tk, tn), lambda i, j, k: (k, j)),   # weight tile
                pl.BlockSpec((1, tn), lambda i, j, k: (0, j)),    # bias tile
            ],
            out_specs=pl.BlockSpec((tm, tn), lambda i, j, k: (i, j)),
            scratch_shapes=[pltpu.VMEM((tm, tn), jnp.float32)],   # f32 accumulator
            compiler_params=pltpu.CompilerParams(
                dimension_semantics=("parallel", "parallel", "arbitrary"),
                vmem_limit_bytes=48 * 1024 * 1024,
            ),
            **common_params,
        )(x_p, w_p, bias2d)

    if (m_pad, n_pad) != (batch, size):
        out_p = out_p[:batch, :size]
    return out_p


class DensePallas:
    """Mirror of the PyTorch Dense module with a Pallas-kernel forward."""

    def __init__(self, prev, size, flags="", *, key=None, dtype=jnp.float32):
        activation = "none"
        for token in flags.lower().split(","):
            if token in ["relu", "tanh", "sigmoid", "softmax", "none", "gelu"]:
                activation = token
        self.activation = activation

        if key is None:
            key = jax.random.PRNGKey(0)
        k_w, k_b = jax.random.split(key)
        # Matches torch.nn.Linear's U(-1/sqrt(prev), 1/sqrt(prev)) init.
        bound = 1.0 / (prev ** 0.5)
        self.weight = jax.random.uniform(
            k_w, (size, prev), dtype=dtype, minval=-bound, maxval=bound)
        self.bias = jax.random.uniform(
            k_b, (size,), dtype=dtype, minval=-bound, maxval=bound)
        # One-time pre-transpose to [prev, size]: K-major RHS gives a lane-dense
        # MXU feed and a lane-dense output (no per-tile XLU transpose in the kernel).
        self.weight_t = jnp.asarray(self.weight.T)

    def __call__(self, feed):
        return dense_forward(feed, self.weight_t, self.bias, self.activation)


if __name__ == "__main__":
    key = jax.random.PRNGKey(0)
    k_x, k_p, k_x2, k_p2 = jax.random.split(key, 4)

    batch, prev, size = 8, 32, 16
    x = jax.random.normal(k_x, (batch, prev), dtype=jnp.float32)

    # ReLU path (single-K fast path).
    layer = DensePallas(prev, size, flags="relu", key=k_p)
    out = jax.block_until_ready(layer(x))
    ref = jnp.maximum(x @ layer.weight.T + layer.bias, 0.0)
    assert out.shape == (batch, size)
    assert jnp.allclose(out, ref, atol=1e-5, rtol=1e-5)

    # Softmax path (exercises padded-N masking + full-row normalization).
    layer_sm = DensePallas(prev, size, flags="softmax", key=k_p)
    out_sm = jax.block_until_ready(layer_sm(x))
    ref_sm = jax.nn.softmax(x @ layer_sm.weight.T + layer_sm.bias, axis=-1)
    assert out_sm.shape == (batch, size)
    assert jnp.allclose(out_sm, ref_sm, atol=2e-2, rtol=2e-2)

    # Multi-K accumulator path (forced with a small K tile): GELU activation.
    b2, p2, s2 = 8, 256, 128
    x2 = jax.random.normal(k_x2, (b2, p2), dtype=jnp.float32)
    layer2 = DensePallas(p2, s2, flags="gelu", key=k_p2)
    out2 = jax.block_until_ready(
        dense_forward(x2, layer2.weight_t, layer2.bias, "gelu", tile_k=128))
    ref2 = jax.nn.gelu(x2 @ layer2.weight.T + layer2.bias, approximate=False)
    assert out2.shape == (b2, s2)
    assert jnp.allclose(out2, ref2, atol=1e-4, rtol=1e-4)

    print("KERNEL_OK")
</pallas_src>

<mosaic_0001>
module attributes {stable_mosaic.version = 11 : i64} {
  func.func @_dense_kernel_single_k(%arg0: i32, %arg1: i32, %arg2: memref<8x128xf32, #tpu.memory_space<vmem>>, %arg3: memref<128x128xf32, #tpu.memory_space<vmem>>, %arg4: memref<1x128xf32, #tpu.memory_space<vmem>>, %arg5: memref<8x128xf32, #tpu.memory_space<vmem>>) attributes {dimension_semantics = [#tpu.dimension_semantics<parallel>, #tpu.dimension_semantics<parallel>], iteration_bounds = array<i64: 1, 1>, scalar_prefetch = 0 : i64, scratch_operands = 0 : i64, tpu.core_type = #tpu.core_type<tc>, window_params = [{transform_indices = @transform_0, window_bounds = array<i64: 8, 128>}, {transform_indices = @transform_1, window_bounds = array<i64: 128, 128>}, {transform_indices = @transform_2, window_bounds = array<i64: 1, 128>}, {transform_indices = @transform_3, window_bounds = array<i64: 8, 128>}]} {
    %c0 = arith.constant 0 : index
    %c0_0 = arith.constant 0 : index
    %0 = vector.load %arg2[%c0, %c0_0] : memref<8x128xf32, #tpu.memory_space<vmem>>, vector<8x128xf32>
    %c0_1 = arith.constant 0 : index
    %c0_2 = arith.constant 0 : index
    %1 = vector.load %arg3[%c0_1, %c0_2] : memref<128x128xf32, #tpu.memory_space<vmem>>, vector<128x128xf32>
    %cst = arith.constant dense<0.000000e+00> : vector<8x128xf32>
    %2 = tpu.matmul %0, %1, %cst {dimension_numbers = #tpu.dot_dimension_numbers<[1], [0], [0], [1], [0, 0, 1, 1], [], []>} : vector<8x128xf32>, vector<128x128xf32>, vector<8x128xf32> -> vector<8x128xf32>
    %c0_3 = arith.constant 0 : index
    %c0_4 = arith.constant 0 : index
    %3 = vector.load %arg4[%c0_3, %c0_4] : memref<1x128xf32, #tpu.memory_space<vmem>>, vector<1x128xf32>
    %4 = vector.broadcast %3 : vector<1x128xf32> to vector<8x128xf32>
    %5 = arith.addf %2, %4 : vector<8x128xf32>
    %cst_5 = arith.constant 0.000000e+00 : f32
    %6 = vector.broadcast %cst_5 : f32 to vector<8x128xf32>
    %7 = arith.maximumf %5, %6 : vector<8x128xf32>
    %c0_6 = arith.constant 0 : index
    %c0_7 = arith.constant 0 : index
    %8 = vector.load %arg5[%c0_6, %c0_7] : memref<8x128xf32, #tpu.memory_space<vmem>>, vector<8x128xf32>
    tpu.vector_store %arg5[%c0_6, %c0_7], %7 {strides = array<i32>} : memref<8x128xf32, #tpu.memory_space<vmem>>, vector<8x128xf32>,
    return
  }
  func.func @transform_0(%arg0: i32, %arg1: i32) -> (i32, i32) {
    %c0_i32 = arith.constant 0 : i32
    %c0_i32_0 = arith.constant 0 : i32
    return %arg0, %c0_i32 : i32, i32
  }
  func.func @transform_1(%arg0: i32, %arg1: i32) -> (i32, i32) {
    %c0_i32 = arith.constant 0 : i32
    %c0_i32_0 = arith.constant 0 : i32
    return %c0_i32, %arg1 : i32, i32
  }
  func.func @transform_2(%arg0: i32, %arg1: i32) -> (i32, i32) {
    %c0_i32 = arith.constant 0 : i32
    %c0_i32_0 = arith.constant 0 : i32
    return %c0_i32, %arg1 : i32, i32
  }
  func.func @transform_3(%arg0: i32, %arg1: i32) -> (i32, i32) {
    %c0_i32 = arith.constant 0 : i32
    return %arg0, %arg1 : i32, i32
  }
}

</mosaic_0001>

<bundles_post_ra>
// kernel: tpu_custom_call.1
= control target key start
LH: loop header
LB: loop body
LE: loop exit
PB: predicated region body
PF: predicated region fallthrough
CT: control target
= control target key end

     0   :  { %8 = vsyncpa [#allocation3], 0  ;;  %s318_s0 = inlined_call_operand.hbm [shape: f32[8,128], index: 0, kind: input, shape index: {}]   ;;  %s319_s1 = inlined_call_operand.hbm [shape: f32[128,128], index: 1, kind: input, shape index: {}]   ;;  %s320_s2 = inlined_call_operand.vmem [shape: f32[1,128], index: 2, kind: input, shape index: {}]   ;;  %s321_s3 = inlined_call_operand.hbm [shape: f32[8,128], index: 3, kind: output, shape index: {}]  }
   0x1   :  { %9 = vsyncpa [#allocation6], 0 }
   0x2   :  { %10 = vsyncpa [#allocation4], 0  ;;  %s279_s12 = smov [#allocation2]   ;;  %s280_s14 = smov [#allocation5]  }
   0x3   :  { %s17_s13 = sshll.u32 %s279_s12, 4  ;;  %s26_s15 = sshll.u32 %s280_s14, 4  ;;  %s18_s13 = int_to_ptr.vmem [resolvable:$true] %s17_s13  ;;  %s27_s15 = int_to_ptr.vmem [resolvable:$true] %s26_s15 }
   0x4   :  { %s221_s16 = scalar_lea.vmem %s18_s13, 128  ;;  %p226_p1 = scmp.lt.s32.totalorder %s18_s13, %s18_s13 }
   0x5   :  { %p222_p0 = scmp.ne.s32.totalorder %s18_s13, %s221_s16  ;;  %p227_p2 = scmp.lt.s32.totalorder %s221_s16, %s221_s16 }
   0x7   :  { %p228_p3 = por %p227_p2, %p226_p1 }
   0x9   :  { %p229_p4 = pnand %p228_p3, %p222_p0 }
   0xb   :  { %232 = shalt.err (!%p229_p4)
}
   0xc   :  { %20 = dma.hbm_to_vmem [thread:$0]  %s318_s0, 128, %s18_s13, [#allocation3]  }
   0xd   :  { %s241_s19 = scalar_lea.vmem %s27_s15, 2048  ;;  %p246_p6 = scmp.lt.s32.totalorder %s27_s15, %s27_s15 }
   0xe   :  { %p242_p5 = scmp.ne.s32.totalorder %s27_s15, %s241_s19  ;;  %p247_p7 = scmp.lt.s32.totalorder %s241_s19, %s241_s19 }
  0x10   :  { %p248_p8 = por %p247_p7, %p246_p6 }
  0x12   :  { %p249_p9 = pnand %p248_p8, %p242_p5 }
  0x14   :  { %252 = shalt.err (!%p249_p9)
}
  0x15   :  { %s281_s20 = smov 128   ;;  %s282_s21 = smov 8  }
  0x16   :  { %32 = dma.hbm_to_vmem [thread:$0]  %s319_s1, 2048, %s27_s15, [#allocation6], %s281_s20, %s281_s20, %s282_s21  }
  0x17   :  { %273 = dma.done.wait [#allocation3], 128  }
  0x18   :  { %274 = vsyncadd [#allocation3], 4294967168 }
  0x19   :  { %275 = dma.done.wait [#allocation6], 2048  }
  0x1a   :  { %276 = vsyncadd [#allocation6], 4294965248  ;;  %v283_v0 = vmov 0.0   ;;  %vm284_vm0 = vmmov 0   ;;  %v57_v1 = vld [vmem:[#allocation5 + $0x78] sm:$0xff]  ;;  %v56_v2 = vld [vmem:[#allocation5 + $0x70] sm:$0xff] }
  0x1b   :  { %171 = vmatprep.subr.mxu0 %v283_v0  ;;  %203 = vmatprep.mubr.msk.f32.mxu0 %vm284_vm0, %v283_v0  ;;  %v55_v3 = vld [vmem:[#allocation5 + $0x68] sm:$0xff]  ;;  %v54_v4 = vld [vmem:[#allocation5 + $0x60] sm:$0xff]  ;;  %v53_v5 = vld [vmem:[#allocation5 + $0x58] sm:$0xff]  ;;  %s285_s24 = smov [#allocation7]  }
  0x1c   :  { %172 = vmatpush3.msra.mxu0 %v57_v1  ;;  %v52_v6 = vld [vmem:[#allocation5 + $0x50] sm:$0xff]  ;;  %v51_v7 = vld [vmem:[#allocation5 + $0x48] sm:$0xff]  ;;  %v50_v8 = vld [vmem:[#allocation5 + $0x40] sm:$0xff]  ;;  %s143_s25 = sshll.u32 %s285_s24, 4  ;;  %s144_s25 = int_to_ptr.vmem [resolvable:$true] %s143_s25 }
  0x1d   :  { %173 = vmatprep.subr.mxu0 %v283_v0  ;;  %v49_v9 = vld [vmem:[#allocation5 + $0x38] sm:$0xff]  ;;  %v48_v10 = vld [vmem:[#allocation5 + $0x30] sm:$0xff]  ;;  %v47_v11 = vld [vmem:[#allocation5 + $0x28] sm:$0xff]  ;;  %s253_s26 = scalar_lea.vmem %s144_s25, 128  ;;  %p258_p11 = scmp.lt.s32.totalorder %s144_s25, %s144_s25 }
  0x1e   :  { %174 = vmatpush3.msra.mxu0 %v56_v2  ;;  %v46_v12 = vld [vmem:[#allocation5 + $0x20] sm:$0xff]  ;;  %v45_v13 = vld [vmem:[#allocation5 + $0x18] sm:$0xff]  ;;  %v44_v14 = vld [vmem:[#allocation5 + $0x10] sm:$0xff]  ;;  %p254_p10 = scmp.ne.s32.totalorder %s144_s25, %s253_s26  ;;  %p259_p12 = scmp.lt.s32.totalorder %s253_s26, %s253_s26 }
  0x1f   :  { %175 = vmatprep.subr.mxu0 %v283_v0  ;;  %v43_v15 = vld [vmem:[#allocation5 + $0x8] sm:$0xff]  ;;  %v42_v16 = vld [vmem:[#allocation5] sm:$0xff]  ;;  %v41_v17 = vld [vmem:[#allocation2] sm:$0xff] }
  0x20   :  { %176 = vmatpush3.msra.mxu0 %v55_v3  ;;  %v153_v18 = vld [vmem:[%s320_s2] ss:$0 sm:$0xff]  ;;  %p260_p13 = por %p259_p12, %p258_p11 }
  0x21   :  { %177 = vmatprep.subr.mxu0 %v283_v0 }
  0x22   :  { %178 = vmatpush3.msra.mxu0 %v54_v4  ;;  %p261_p0 = pnand %p260_p13, %p254_p10 }
  0x23   :  { %179 = vmatprep.subr.mxu0 %v283_v0 }
  0x24   :  { %180 = vmatpush3.msra.mxu0 %v53_v5 }
  0x25   :  { %181 = vmatprep.subr.mxu0 %v283_v0 }
  0x26   :  { %182 = vmatpush3.msra.mxu0 %v52_v6 }
  0x27   :  { %183 = vmatprep.subr.mxu0 %v283_v0 }
  0x28   :  { %184 = vmatpush3.msra.mxu0 %v51_v7 }
  0x29   :  { %185 = vmatprep.subr.mxu0 %v283_v0 }
  0x2a   :  { %186 = vmatpush3.msra.mxu0 %v50_v8 }
  0x2b   :  { %187 = vmatprep.subr.mxu0 %v283_v0 }
  0x2c   :  { %188 = vmatpush3.msra.mxu0 %v49_v9 }
  0x2d   :  { %189 = vmatprep.subr.mxu0 %v283_v0 }
  0x2e   :  { %190 = vmatpush3.msra.mxu0 %v48_v10 }
  0x2f   :  { %191 = vmatprep.subr.mxu0 %v283_v0 }
  0x30   :  { %192 = vmatpush3.msra.mxu0 %v47_v11 }
  0x31   :  { %193 = vmatprep.subr.mxu0 %v283_v0 }
  0x32   :  { %194 = vmatpush3.msra.mxu0 %v46_v12 }
  0x33   :  { %195 = vmatprep.subr.mxu0 %v283_v0 }
  0x34   :  { %196 = vmatpush3.msra.mxu0 %v45_v13 }
  0x35   :  { %197 = vmatprep.subr.mxu0 %v283_v0 }
  0x36   :  { %198 = vmatpush3.msra.mxu0 %v44_v14 }
  0x37   :  { %199 = vmatprep.subr.mxu0 %v283_v0 }
  0x38   :  { %200 = vmatpush3.msra.mxu0 %v43_v15 }
  0x39   :  { %201 = vmatprep.subr.mxu0 %v283_v0 }
  0x3a   :  { %202 = vmatpush3.msra.mxu0 %v42_v16 }
  0x3b   :  { %204 = vmatmul.mubr.f32.vlgmr.msra.gmra.mxu0 %v41_v17 }
  0xfb   :  { %v131_v19 = vpop.f32.mrf.mxu0 }
  0xfc   :  { %v132_v20 = vadd.f32 %v153_v18, %v131_v19 }
  0xfd   :  { %v205_v21 = vpop.f32.mrf.mxu0 }
  0xfe   :  { %v135_v22 = vmax.f32 %v132_v20, 0.0 }
 0x100   :  { %136 = vst [vmem:[#allocation7] sm:$0xff] %v135_v22 }
 0x101   :  { %264 = shalt.err (!%p261_p0)
}
 0x102   :  { %146 = dma.vmem_to_hbm [thread:$0]  %s144_s25, 128, %s321_s3, [#allocation4]  }
 0x103   :  { %277 = dma.done.wait [#allocation4], 128  }
 0x104   :  { %278 = vsyncadd [#allocation4], 4294967168 }
 0x105   :  { %150 = vsyncpa [#allocation3], 1 }
 0x106   :  { %151 = vsyncpa [#allocation6], 1 }
 0x107   :  { %152 = vsyncpa [#allocation4], 1 }

</bundles_post_ra>
